<compile_context>
chip_gen: v5e
topology: v5e:2x2
jax: 0.10.0
libtpu: 0.0.40
codegen_flags: <defaults>
</compile_context>

<pallas_src>
import jax
import jax.numpy as jnp
from jax.experimental import pallas as pl
from jax.experimental.pallas import tpu as pltpu

N_FEATURE = 12
N_HIDDEN = 20
N_OUTPUT = 7


def bpnet_kernel(x_ref, w1_ref, b1_ref, w2_ref, b2_ref, o_ref):
    # Natural ("batch on sublanes") layout:
    #   x_ref : [TB, F]     w1_ref: [F, H]  (W1^T)   b1_ref: [1, H]
    #   h     : [TB, H]     w2_ref: [H, O]  (W2^T)   b2_ref: [1, O]
    #   o_ref : [TB, O]
    x = x_ref[...]  # streamed dtype (f32 or bf16); MXU accumulates in f32 below

    # hidden = relu(x @ W1^T + b1)
    h = jnp.dot(x, w1_ref[...], preferred_element_type=jnp.float32) + b1_ref[...]
    h = jnp.maximum(h, 0.0)

    # logits = hidden @ W2^T + b2
    logits = (
        jnp.dot(h.astype(w2_ref.dtype), w2_ref[...], preferred_element_type=jnp.float32)
        + b2_ref[...]
    )

    # numerically stable softmax over the class axis (last axis), EXACT divide
    m = jnp.max(logits, axis=-1, keepdims=True)
    e = jnp.exp(logits - m)
    s = jnp.sum(e, axis=-1, keepdims=True)
    o_ref[...] = (e / s).astype(o_ref.dtype)


def bpnet_forward(x, w1, b1, w2, b2, *, tile_b=8192, out_dtype=jnp.float32):
    """Forward pass of BPNetModel.

    x : [B, N_FEATURE]          (f32; pass bf16 to halve the dominant HBM read)
    w1: [N_HIDDEN, N_FEATURE]   (PyTorch Linear weight layout: [out, in])
    b1: [N_HIDDEN]
    w2: [N_OUTPUT, N_HIDDEN]
    b2: [N_OUTPUT]
    returns softmax probabilities [B, N_OUTPUT].
    """
    B, F = x.shape
    assert F == N_FEATURE

    # Matmul operands stream in x's dtype (MXU-native bf16 path if x is bf16);
    # biases stay f32 so bias/ReLU/softmax math is f32.
    cdt = x.dtype
    w1t = w1.T.astype(cdt)                                # [F, H], tiny, one-time
    w2t = w2.T.astype(cdt)                                # [H, O]
    b1r = b1.reshape(1, N_HIDDEN).astype(jnp.float32)
    b2r = b2.reshape(1, N_OUTPUT).astype(jnp.float32)

    # Batch tile: big enough to amortize ~0.35 us/step grid overhead, small
    # enough that the lane-padded (tb, 128) VMEM blocks (x + out, double
    # buffered, plus temporaries) stay well under every generation's VMEM.
    tb = min(tile_b, B)
    if pl.cdiv(B, tb) == 1 and B >= 2048:
        # Keep >= 2 grid steps so both v7x TensorCores get work (neutral on
        # single-TC v5e/v6e).  tb must stay a multiple of 8 (sublane tile).
        tb = (((B + 1) // 2) + 7) // 8 * 8
    grid = (pl.cdiv(B, tb),)  # last block may be partial; Pallas masks it

    out = pl.pallas_call(
        bpnet_kernel,
        out_shape=jax.ShapeDtypeStruct((B, N_OUTPUT), out_dtype),
        grid_spec=pltpu.PrefetchScalarGridSpec(
            num_scalar_prefetch=0,
            grid=grid,
            in_specs=[
                # x: streamed one batch tile per grid step (natural layout,
                # single HBM pass — no wrapper transpose/pad).
                pl.BlockSpec((tb, N_FEATURE), lambda i: (i, 0)),
                # weights/biases: constant index_map -> resident across tiles
                pl.BlockSpec((N_FEATURE, N_HIDDEN), lambda i: (0, 0)),
                pl.BlockSpec((1, N_HIDDEN), lambda i: (0, 0)),
                pl.BlockSpec((N_HIDDEN, N_OUTPUT), lambda i: (0, 0)),
                pl.BlockSpec((1, N_OUTPUT), lambda i: (0, 0)),
            ],
            out_specs=pl.BlockSpec((tb, N_OUTPUT), lambda i: (i, 0)),
        ),
        compiler_params=pltpu.CompilerParams(
            dimension_semantics=("parallel",),      # megacore sharding on v7x
            vmem_limit_bytes=64 * 1024 * 1024,      # > v5e's 16 MiB default scope
        ),
    )(x, w1t, b1r, w2t, b2r)
    return out


def init_params(key):
    """Deterministic init mimicking torch.nn.Linear default (uniform +-1/sqrt(fan_in)).

    Weights are stored in PyTorch layout: [out_features, in_features]."""
    k1, k2, k3, k4 = jax.random.split(key, 4)
    bound1 = 1.0 / (N_FEATURE ** 0.5)
    bound2 = 1.0 / (N_HIDDEN ** 0.5)
    w1 = jax.random.uniform(k1, (N_HIDDEN, N_FEATURE), jnp.float32, -bound1, bound1)
    b1 = jax.random.uniform(k2, (N_HIDDEN,), jnp.float32, -bound1, bound1)
    w2 = jax.random.uniform(k3, (N_OUTPUT, N_HIDDEN), jnp.float32, -bound2, bound2)
    b2 = jax.random.uniform(k4, (N_OUTPUT,), jnp.float32, -bound2, bound2)
    return w1, b1, w2, b2


if __name__ == "__main__":
    key = jax.random.PRNGKey(0)
    k_x, k_p = jax.random.split(key)

    batch = 8
    x = jax.random.normal(k_x, (batch, N_FEATURE), jnp.float32)
    w1, b1, w2, b2 = init_params(k_p)

    out = bpnet_forward(x, w1, b1, w2, b2)
    out = jax.block_until_ready(out)

    # reference: softmax(relu(x @ W1^T + b1) @ W2^T + b2, dim=1)
    ref_h = jnp.maximum(x @ w1.T + b1, 0.0)
    ref = jax.nn.softmax(ref_h @ w2.T + b2, axis=1)

    assert out.shape == (batch, N_OUTPUT)
    assert jnp.allclose(out, ref, atol=2e-3, rtol=2e-3), "mismatch vs reference"
    # exact softmax divide -> rows sum to 1 up to f32 rounding
    assert jnp.allclose(jnp.sum(out, axis=1), 1.0, atol=1e-3)

    print("KERNEL_OK")
</pallas_src>

<mosaic_0001>
module attributes {stable_mosaic.version = 11 : i64} {
  func.func @bpnet_kernel(%arg0: i32, %arg1: memref<8x12xf32, #tpu.memory_space<vmem>>, %arg2: memref<12x20xf32, #tpu.memory_space<vmem>>, %arg3: memref<1x20xf32, #tpu.memory_space<vmem>>, %arg4: memref<20x7xf32, #tpu.memory_space<vmem>>, %arg5: memref<1x7xf32, #tpu.memory_space<vmem>>, %arg6: memref<8x7xf32, #tpu.memory_space<vmem>>) attributes {dimension_semantics = [#tpu.dimension_semantics<parallel>], iteration_bounds = array<i64: 1>, scalar_prefetch = 0 : i64, scratch_operands = 0 : i64, tpu.core_type = #tpu.core_type<tc>, window_params = [{transform_indices = @transform_0, window_bounds = array<i64: 8, 12>}, {pipeline_mode = #tpu.pipeline_mode<synchronous>, transform_indices = @transform_1, window_bounds = array<i64: 12, 20>}, {pipeline_mode = #tpu.pipeline_mode<synchronous>, transform_indices = @transform_2, window_bounds = array<i64: 1, 20>}, {pipeline_mode = #tpu.pipeline_mode<synchronous>, transform_indices = @transform_3, window_bounds = array<i64: 20, 7>}, {pipeline_mode = #tpu.pipeline_mode<synchronous>, transform_indices = @transform_4, window_bounds = array<i64: 1, 7>}, {transform_indices = @transform_5, window_bounds = array<i64: 8, 7>}]} {
    %c0 = arith.constant 0 : index
    %c0_0 = arith.constant 0 : index
    %0 = vector.load %arg1[%c0, %c0_0] : memref<8x12xf32, #tpu.memory_space<vmem>>, vector<8x12xf32>
    %c0_1 = arith.constant 0 : index
    %c0_2 = arith.constant 0 : index
    %1 = vector.load %arg2[%c0_1, %c0_2] : memref<12x20xf32, #tpu.memory_space<vmem>>, vector<12x20xf32>
    %cst = arith.constant dense<0.000000e+00> : vector<8x20xf32>
    %2 = tpu.matmul %0, %1, %cst {dimension_numbers = #tpu.dot_dimension_numbers<[1], [0], [0], [1], [0, 0, 1, 1], [], []>} : vector<8x12xf32>, vector<12x20xf32>, vector<8x20xf32> -> vector<8x20xf32>
    %c0_3 = arith.constant 0 : index
    %c0_4 = arith.constant 0 : index
    %3 = vector.load %arg3[%c0_3, %c0_4] : memref<1x20xf32, #tpu.memory_space<vmem>>, vector<1x20xf32>
    %4 = vector.broadcast %3 : vector<1x20xf32> to vector<8x20xf32>
    %5 = arith.addf %2, %4 : vector<8x20xf32>
    %cst_5 = arith.constant 0.000000e+00 : f32
    %6 = vector.broadcast %cst_5 : f32 to vector<8x20xf32>
    %7 = arith.maximumf %5, %6 : vector<8x20xf32>
    %c0_6 = arith.constant 0 : index
    %c0_7 = arith.constant 0 : index
    %8 = vector.load %arg4[%c0_6, %c0_7] : memref<20x7xf32, #tpu.memory_space<vmem>>, vector<20x7xf32>
    %cst_8 = arith.constant dense<0.000000e+00> : vector<8x7xf32>
    %9 = tpu.matmul %7, %8, %cst_8 {dimension_numbers = #tpu.dot_dimension_numbers<[1], [0], [0], [1], [0, 0, 1, 1], [], []>} : vector<8x20xf32>, vector<20x7xf32>, vector<8x7xf32> -> vector<8x7xf32>
    %c0_9 = arith.constant 0 : index
    %c0_10 = arith.constant 0 : index
    %10 = vector.load %arg5[%c0_9, %c0_10] : memref<1x7xf32, #tpu.memory_space<vmem>>, vector<1x7xf32>
    %11 = vector.broadcast %10 : vector<1x7xf32> to vector<8x7xf32>
    %12 = arith.addf %9, %11 : vector<8x7xf32>
    %cst_11 = arith.constant dense<0xFF800000> : vector<8xf32>
    %13 = vector.multi_reduction <maximumf>, %12, %cst_11 [1] : vector<8x7xf32> to vector<8xf32>
    %14 = vector.shape_cast %13 : vector<8xf32> to vector<8x1xf32>
    %15 = vector.broadcast %14 : vector<8x1xf32> to vector<8x7xf32>
    %16 = arith.subf %12, %15 : vector<8x7xf32>
    %17 = math.exp %16 : vector<8x7xf32>
    %cst_12 = arith.constant dense<0.000000e+00> : vector<8xf32>
    %18 = vector.multi_reduction <add>, %17, %cst_12 [1] : vector<8x7xf32> to vector<8xf32>
    %19 = vector.shape_cast %18 : vector<8xf32> to vector<8x1xf32>
    %20 = vector.broadcast %19 : vector<8x1xf32> to vector<8x7xf32>
    %21 = arith.divf %17, %20 : vector<8x7xf32>
    %c0_13 = arith.constant 0 : index
    %c0_14 = arith.constant 0 : index
    %22 = vector.load %arg6[%c0_13, %c0_14] : memref<8x7xf32, #tpu.memory_space<vmem>>, vector<8x7xf32>
    tpu.vector_store %arg6[%c0_13, %c0_14], %21 {strides = array<i32>} : memref<8x7xf32, #tpu.memory_space<vmem>>, vector<8x7xf32>,
    return
  }
  func.func @transform_0(%arg0: i32) -> (i32, i32) {
    %c0_i32 = arith.constant 0 : i32
    %c0_i32_0 = arith.constant 0 : i32
    return %arg0, %c0_i32 : i32, i32
  }
  func.func @transform_1(%arg0: i32) -> (i32, i32) {
    %c0_i32 = arith.constant 0 : i32
    %c0_i32_0 = arith.constant 0 : i32
    %c0_i32_1 = arith.constant 0 : i32
    return %c0_i32, %c0_i32_0 : i32, i32
  }
  func.func @transform_2(%arg0: i32) -> (i32, i32) {
    %c0_i32 = arith.constant 0 : i32
    %c0_i32_0 = arith.constant 0 : i32
    %c0_i32_1 = arith.constant 0 : i32
    return %c0_i32, %c0_i32_0 : i32, i32
  }
  func.func @transform_3(%arg0: i32) -> (i32, i32) {
    %c0_i32 = arith.constant 0 : i32
    %c0_i32_0 = arith.constant 0 : i32
    %c0_i32_1 = arith.constant 0 : i32
    return %c0_i32, %c0_i32_0 : i32, i32
  }
  func.func @transform_4(%arg0: i32) -> (i32, i32) {
    %c0_i32 = arith.constant 0 : i32
    %c0_i32_0 = arith.constant 0 : i32
    %c0_i32_1 = arith.constant 0 : i32
    return %c0_i32, %c0_i32_0 : i32, i32
  }
  func.func @transform_5(%arg0: i32) -> (i32, i32) {
    %c0_i32 = arith.constant 0 : i32
    %c0_i32_0 = arith.constant 0 : i32
    return %arg0, %c0_i32 : i32, i32
  }
}

</mosaic_0001>

<bundles_post_ra>
// kernel: tpu_custom_call.1
= control target key start
LH: loop header
LB: loop body
LE: loop exit
PB: predicated region body
PF: predicated region fallthrough
CT: control target
= control target key end

     0   :  { %vm32_vm0 = vcmask 1043456   ;;  %vm28_vm1 = vcmask 97280   ;;  %s231_s0 = inlined_call_operand.vmem [shape: f32[8,12], index: 0, kind: input, shape index: {}]   ;;  %s232_s1 = inlined_call_operand.vmem [shape: f32[12,20], index: 1, kind: input, shape index: {}]   ;;  %s233_s2 = inlined_call_operand.vmem [shape: f32[1,20], index: 2, kind: input, shape index: {}]   ;;  %s234_s3 = inlined_call_operand.vmem [shape: f32[20,7], index: 3, kind: input, shape index: {}]   ;;  %s235_s4 = inlined_call_operand.vmem [shape: f32[1,7], index: 4, kind: input, shape index: {}]   ;;  %s236_s5 = inlined_call_operand.hbm [shape: f32[8,7], index: 5, kind: output, shape index: {}]  }
   0x1   :  { %v23_v0 = vld [vmem:[%s232_s1 + $0x8] sm:$0xf]  ;;  %v22_v1 = vld [vmem:[%s232_s1] sm:$0xff] }
   0x2   :  { %133 = vmatpush.msk.msra.mxu0 %vm32_vm0, %v23_v0  ;;  %v21_v2 = vld [vmem:[%s231_s0] sm:$0xff] }
   0x3   :  { %10 = vsyncpa [#allocation3], 0  ;;  %v59_v3 = vld [vmem:[%s234_s3 + $0x10] sm:$0xf]  ;;  %v58_v4 = vld [vmem:[%s234_s3 + $0x8] sm:$0xff]  ;;  %vm64_vm2 = vcmask 162816  }
   0x4   :  { %51 = vmatpush.msra.mxu0 %v22_v1  ;;  %135 = vmatpush.msk.msra.mxu1 %vm32_vm0, %v59_v3  ;;  %v57_v5 = vld [vmem:[%s234_s3] sm:$0xff]  ;;  %vm91_vm3 = vcmask 56320   ;;  %s124_s8 = sshll.u32 %s236_s5, 4  ;;  %s125_s8 = int_to_ptr.hbm [resolvable:$true] %s124_s8 }
   0x5   :  { %134 = vmatmul.msk.f32.vlgmr.msra.gmra.mxu0 %vm28_vm1, %v21_v2  ;;  %v138_v6 = vld [vmem:[%s233_s2] ss:$0 sm:$0xff]  ;;  %s170_s2 = smov [#allocation2]  }
   0x6   :  { %85 = vmatpush.msra.mxu1 %v58_v4  ;;  %v139_v10 = vld [vmem:[%s235_s4] ss:$0 sm:$0xff]  ;;  %s122_s3 = sshll.u32 %s170_s2, 4  ;;  %s123_s3 = int_to_ptr.vmem [resolvable:$true] %s122_s3 }
   0x8   :  { %86 = vmatpush.msra.mxu1 %v57_v5 }
  0x82   :  { %v53_v7 = vpop.f32.mrf.mxu0 }
  0x83   :  { %v54_v8 = vadd.f32 %v138_v6, %v53_v7 }
  0x85   :  { %v56_v9 = vmax.f32 %v54_v8, 0.0 }
  0x87   :  { %136 = vmatmul.msk.f32.vlgmr.msra.gmra.mxu1 %vm64_vm2, %v56_v9 }
 0x104   :  { %v88_v11 = vpop.f32.mrf.mxu1 }
 0x105   :  { %v89_v12 = vadd.f32 %v139_v10, %v88_v11 }
 0x107   :  { %v92_v13 = vsel %vm91_vm3, %v89_v12, -inf }
 0x108   :  { %93 = vmax.xlane.f32.xlu0 %v92_v13 }
 0x17b   :  { %v94_v14 = vpop.xlane.xlu0 %93 }
 0x17c   :  { %v95_v15 = vsub.f32 %v89_v12, %v94_v14 }
 0x17e   :  { %v96_v16 = vmul.f32 1.442695, %v95_v15 }
 0x180   :  { %140 = vpow2.f32 %v96_v16 }
 0x186   :  { %v141_v17 = vpop.eup %140 }
 0x187   :  { %v98_v18 = vsel %vm91_vm3, %v141_v17, 0.0 }
 0x188   :  { %99 = vadd.xlane.f32.xlu0 %v98_v18 }
 0x1fb   :  { %v100_v19 = vpop.xlane.xlu0 %99 }
 0x1fc   :  { %142 = vrcp.f32 %v100_v19  ;;  %v112_v23 = vand.u32 2147483648, %v100_v19  ;;  %v110_v25 = vand.u32 2147483647, %v100_v19  ;;  %vm106_vm5 = vweird.f32 %v100_v19 }
 0x1fe   :  { %v113_v27 = vor.u32 1.1754944e-38, %v112_v23  ;;  %vm111_vm7 = vcmp.eq.f32.partialorder %v110_v25, 8.507059e+37 }
 0x202   :  { %v143_v20 = vpop.eup %142 }
 0x203   :  { %v102_v21 = vmul.f32 %v143_v20, %v100_v19  ;;  %vm107_vm4 = vweird.f32 %v143_v20 }
 0x204   :  { %vm108_vm6 = vmor %vm106_vm5, %vm107_vm4 }
 0x205   :  { %v103_v22 = vsub.f32 1.0, %v102_v21 }
 0x207   :  { %v104_v24 = vmul.f32 %v143_v20, %v103_v22 }
 0x209   :  { %v105_v26 = vadd.f32 %v143_v20, %v104_v24 }
 0x20b   :  { %v109_v28 = vsel %vm108_vm6, %v143_v20, %v105_v26 }
 0x20c   :  { %v114_v29 = vsel %vm111_vm7, %v113_v27, %v109_v28 }
 0x20d   :  { %v115_v30 = vmul.f32 %v141_v17, %v114_v29 }
 0x20f   :  { %116 = vst.msk [vmem:[#allocation2] sm:$0xff] %vm91_vm3, %v115_v30 }
 0x210   :  { %127 = dma.vmem_to_hbm [thread:$0]  %s123_s3, 128, %s125_s8, [#allocation3]  }
 0x211   :  { %168 = dma.done.wait [#allocation3], 128  }
 0x212   :  { %169 = vsyncadd [#allocation3], 4294967168 }
 0x213   :  { %132 = vsyncpa [#allocation3], 1 }

</bundles_post_ra>
